<compile_context>
chip_gen: v7x
topology: tpu7x:2x2x1
jax: 0.10.0
libtpu: 0.0.40
codegen_flags: <defaults>
</compile_context>

<pallas_src>
import math
import jax
import jax.numpy as jnp
from jax.experimental import pallas as pl
from jax.experimental.pallas import tpu as pltpu


def _mgcn_kernel(x_ref, w_ref, m_ref, adj_ref, bias_ref, o_ref, mod_ref):
    # x_ref:    (TB*J, C_in)   f32  -- TB batch elems, joints flattened to rows
    # w_ref:    (C_in, C_out)  f32  (VMEM-resident across grid steps)
    # m_ref:    (J, C_out)     f32  (VMEM-resident)
    # adj_ref:  (J, J)         f32  symmetrized adjacency (VMEM-resident)
    # bias_ref: (1, TB*C_out)  f32  bias tiled TB times along lanes
    # o_ref:    (J, TB*C_out)  f32  lane-dense output block
    # mod_ref:  (J, TB*C_out)  f32  VMEM scratch (modulated h0, repacked)
    J, C_out = m_ref.shape
    TB = x_ref.shape[0] // J

    # Matmul 1: one MXU call covering the whole batch tile, f32 accumulation.
    h0 = jnp.dot(x_ref[...], w_ref[...],
                 preferred_element_type=jnp.float32)            # (TB*J, C_out)

    # Modulation (VPU) + repack lane-dense:
    #   mod[k, b*C_out + o] = M[k, o] * h0[b*J + k, o]
    m = m_ref[...]
    for b in range(TB):  # static unroll; J-aligned sublane slices of h0
        mod_ref[:, b * C_out:(b + 1) * C_out] = m * h0[b * J:(b + 1) * J, :]

    # Matmul 2: fused across the batch tile -> lane-dense (J, TB*C_out) output.
    out = jnp.dot(adj_ref[...], mod_ref[...],
                  preferred_element_type=jnp.float32)           # (J, TB*C_out)
    o_ref[...] = out + bias_ref[...]


def prepare_params(W, M, adj, adj2, bias, tb=16):
    """One-time parameter prep, hoisted out of the per-call hot path."""
    a = adj + adj2
    adj_sym = ((a.T + a) * 0.5).astype(jnp.float32)
    C_out = W.shape[-1]
    bias_tiled = jnp.tile(jnp.asarray(bias, jnp.float32).reshape(1, C_out), (1, tb))
    return (jnp.asarray(W, jnp.float32), jnp.asarray(M, jnp.float32),
            adj_sym, bias_tiled)


@jax.jit
def modulated_graph_conv(x, W, M, adj_sym, bias_tiled):
    """x: (B, J, C_in) -> (B, J, C_out)."""
    B, J, C_in = x.shape
    C_out = W.shape[1]
    TB = bias_tiled.shape[1] // C_out          # batch tile size (static)
    nb = pl.cdiv(B, TB)
    B_pad = nb * TB

    # TPU tiling constraints for this kernel's block shapes.
    assert (TB * J) % 8 == 0, "pick tb so tb * num_joints is a multiple of 8"
    assert nb == 1 or (TB * C_out) % 128 == 0, "pick tb so tb * out_features % 128 == 0"

    if B_pad != B:
        x = jnp.pad(x, ((0, B_pad - B), (0, 0), (0, 0)))
    x2 = x.reshape(B_pad * J, C_in)            # row-major: row = b*J + j (free reshape)

    out2 = pl.pallas_call(
        _mgcn_kernel,
        out_shape=jax.ShapeDtypeStruct((J, B_pad * C_out), jnp.float32),
        grid_spec=pltpu.PrefetchScalarGridSpec(
            num_scalar_prefetch=0,
            grid=(nb,),
            in_specs=[
                pl.BlockSpec((TB * J, C_in), lambda t: (t, 0)),    # x tile (pipelined)
                pl.BlockSpec((C_in, C_out), lambda t: (0, 0)),     # W   (VMEM-resident)
                pl.BlockSpec((J, C_out), lambda t: (0, 0)),        # M   (VMEM-resident)
                pl.BlockSpec((J, J), lambda t: (0, 0)),            # adj (VMEM-resident)
                pl.BlockSpec((1, TB * C_out), lambda t: (0, 0)),   # bias(VMEM-resident)
            ],
            out_specs=pl.BlockSpec((J, TB * C_out), lambda t: (0, t)),
            scratch_shapes=[pltpu.VMEM((J, TB * C_out), jnp.float32)],
        ),
        compiler_params=pltpu.CompilerParams(
            dimension_semantics=("parallel",),   # >=2 steps keeps both v7x TCs busy
        ),
    )(x2, W, M, adj_sym, bias_tiled)

    # (J, B_pad*C_out) -> (B, J, C_out)
    out = out2.reshape(J, B_pad, C_out).transpose(1, 0, 2)
    return out[:B]


def init_params(key, in_features, out_features, num_joints):
    """Deterministic parameter init mirroring the PyTorch __init__ shapes."""
    kW, kM, kb, kx = jax.random.split(key, 4)

    # xavier_uniform_ with gain=1.414 on W of shape (1, in, out):
    gain = 1.414
    fan_in_W = in_features * out_features
    fan_out_W = out_features
    bound_W = gain * math.sqrt(6.0 / (fan_in_W + fan_out_W))
    W = jax.random.uniform(kW, (in_features, out_features), jnp.float32,
                           minval=-bound_W, maxval=bound_W)

    # xavier_uniform_ with gain=1.414 on M of shape (J, out)
    bound_M = gain * math.sqrt(6.0 / (num_joints + out_features))
    M = jax.random.uniform(kM, (num_joints, out_features), jnp.float32,
                           minval=-bound_M, maxval=bound_M)

    # adj: deterministic synthetic adjacency (ring + self loops), float32
    eye = jnp.eye(num_joints, dtype=jnp.float32)
    ring = jnp.roll(eye, 1, axis=1) + jnp.roll(eye, -1, axis=1)
    adj = eye + 0.5 * ring

    # adj2: nn.Parameter(ones_like(adj)) then constant_(1e-6)
    adj2 = jnp.full((num_joints, num_joints), 1e-6, dtype=jnp.float32)

    # bias: uniform(-stdv, stdv), stdv = 1/sqrt(out_features)
    stdv = 1.0 / math.sqrt(out_features)
    bias = jax.random.uniform(kb, (out_features,), jnp.float32,
                              minval=-stdv, maxval=stdv)

    return W, M, adj, adj2, bias, kx


def reference_forward(x, W, M, adj, adj2, bias):
    """Pure-JAX f32 reference matching the PyTorch forward."""
    h0 = jnp.einsum("bjc,co->bjo", x, W)
    a = adj + adj2
    a = (a.T + a) * 0.5
    out = jnp.einsum("jk,bko->bjo", a, M * h0)
    return out + bias.reshape(1, 1, -1)


if __name__ == "__main__":
    # TB=16 batch tile -> matmul1 has 256 rows, output block 512 lanes, grid of 2.
    B, J, C_in, C_out = 32, 16, 16, 32
    TB = 16

    key = jax.random.PRNGKey(0)
    W, M, adj, adj2, bias, kx = init_params(key, C_in, C_out, J)
    x = jax.random.normal(kx, (B, J, C_in), dtype=jnp.float32)

    params = prepare_params(W, M, adj, adj2, bias, tb=TB)
    out = modulated_graph_conv(x, *params)
    out = jax.block_until_ready(out)

    ref = reference_forward(x, W, M, adj, adj2, bias)
    assert out.shape == (B, J, C_out)
    # Both kernel and reference run the matmuls on the MXU at default precision;
    # tolerance covers accumulation-order / matmul-pass differences.
    assert jnp.allclose(out, ref, atol=3e-2, rtol=3e-2), "mismatch vs reference"

    print("KERNEL_OK")
</pallas_src>

<mosaic_0001>
module attributes {stable_mosaic.version = 11 : i64} {
  func.func @_mgcn_kernel(%arg0: i32, %arg1: memref<256x16xf32, #tpu.memory_space<vmem>>, %arg2: memref<16x32xf32, #tpu.memory_space<vmem>>, %arg3: memref<16x32xf32, #tpu.memory_space<vmem>>, %arg4: memref<16x16xf32, #tpu.memory_space<vmem>>, %arg5: memref<1x512xf32, #tpu.memory_space<vmem>>, %arg6: memref<16x512xf32, #tpu.memory_space<vmem>>, %arg7: memref<16x512xf32, #tpu.memory_space<vmem>>) attributes {dimension_semantics = [#tpu.dimension_semantics<parallel>], iteration_bounds = array<i64: 2>, scalar_prefetch = 0 : i64, scratch_operands = 1 : i64, tpu.core_type = #tpu.core_type<tc>, window_params = [{transform_indices = @transform_0, window_bounds = array<i64: 256, 16>}, {pipeline_mode = #tpu.pipeline_mode<synchronous>, transform_indices = @transform_1, window_bounds = array<i64: 16, 32>}, {pipeline_mode = #tpu.pipeline_mode<synchronous>, transform_indices = @transform_2, window_bounds = array<i64: 16, 32>}, {pipeline_mode = #tpu.pipeline_mode<synchronous>, transform_indices = @transform_3, window_bounds = array<i64: 16, 16>}, {pipeline_mode = #tpu.pipeline_mode<synchronous>, transform_indices = @transform_4, window_bounds = array<i64: 1, 512>}, {transform_indices = @transform_5, window_bounds = array<i64: 16, 512>}]} {
    %c0 = arith.constant 0 : index
    %c0_0 = arith.constant 0 : index
    %0 = vector.load %arg1[%c0, %c0_0] : memref<256x16xf32, #tpu.memory_space<vmem>>, vector<256x16xf32>
    %c0_1 = arith.constant 0 : index
    %c0_2 = arith.constant 0 : index
    %1 = vector.load %arg2[%c0_1, %c0_2] : memref<16x32xf32, #tpu.memory_space<vmem>>, vector<16x32xf32>
    %cst = arith.constant dense<0.000000e+00> : vector<256x32xf32>
    %2 = tpu.matmul %0, %1, %cst {dimension_numbers = #tpu.dot_dimension_numbers<[1], [0], [0], [1], [0, 0, 1, 1], [], []>} : vector<256x16xf32>, vector<16x32xf32>, vector<256x32xf32> -> vector<256x32xf32>
    %c0_3 = arith.constant 0 : index
    %c0_4 = arith.constant 0 : index
    %3 = vector.load %arg3[%c0_3, %c0_4] : memref<16x32xf32, #tpu.memory_space<vmem>>, vector<16x32xf32>
    %4 = vector.extract_strided_slice %2 {offsets = [0, 0], sizes = [16, 32], strides = [1, 1]} : vector<256x32xf32> to vector<16x32xf32>
    %5 = arith.mulf %3, %4 : vector<16x32xf32>
    %c0_5 = arith.constant 0 : index
    %c0_6 = arith.constant 0 : index
    %6 = vector.load %arg7[%c0_5, %c0_6] : memref<16x512xf32, #tpu.memory_space<vmem>>, vector<16x32xf32>
    tpu.vector_store %arg7[%c0_5, %c0_6], %5 {strides = array<i32>} : memref<16x512xf32, #tpu.memory_space<vmem>>, vector<16x32xf32>,
    %7 = vector.extract_strided_slice %2 {offsets = [16, 0], sizes = [16, 32], strides = [1, 1]} : vector<256x32xf32> to vector<16x32xf32>
    %8 = arith.mulf %3, %7 : vector<16x32xf32>
    %c0_7 = arith.constant 0 : index
    %c32 = arith.constant 32 : index
    %9 = vector.load %arg7[%c0_7, %c32] : memref<16x512xf32, #tpu.memory_space<vmem>>, vector<16x32xf32>
    tpu.vector_store %arg7[%c0_7, %c32], %8 {strides = array<i32>} : memref<16x512xf32, #tpu.memory_space<vmem>>, vector<16x32xf32>,
    %10 = vector.extract_strided_slice %2 {offsets = [32, 0], sizes = [16, 32], strides = [1, 1]} : vector<256x32xf32> to vector<16x32xf32>
    %11 = arith.mulf %3, %10 : vector<16x32xf32>
    %c0_8 = arith.constant 0 : index
    %c64 = arith.constant 64 : index
    %12 = vector.load %arg7[%c0_8, %c64] : memref<16x512xf32, #tpu.memory_space<vmem>>, vector<16x32xf32>
    tpu.vector_store %arg7[%c0_8, %c64], %11 {strides = array<i32>} : memref<16x512xf32, #tpu.memory_space<vmem>>, vector<16x32xf32>,
    %13 = vector.extract_strided_slice %2 {offsets = [48, 0], sizes = [16, 32], strides = [1, 1]} : vector<256x32xf32> to vector<16x32xf32>
    %14 = arith.mulf %3, %13 : vector<16x32xf32>
    %c0_9 = arith.constant 0 : index
    %c96 = arith.constant 96 : index
    %15 = vector.load %arg7[%c0_9, %c96] : memref<16x512xf32, #tpu.memory_space<vmem>>, vector<16x32xf32>
    tpu.vector_store %arg7[%c0_9, %c96], %14 {strides = array<i32>} : memref<16x512xf32, #tpu.memory_space<vmem>>, vector<16x32xf32>,
    %16 = vector.extract_strided_slice %2 {offsets = [64, 0], sizes = [16, 32], strides = [1, 1]} : vector<256x32xf32> to vector<16x32xf32>
    %17 = arith.mulf %3, %16 : vector<16x32xf32>
    %c0_10 = arith.constant 0 : index
    %c128 = arith.constant 128 : index
    %18 = vector.load %arg7[%c0_10, %c128] : memref<16x512xf32, #tpu.memory_space<vmem>>, vector<16x32xf32>
    tpu.vector_store %arg7[%c0_10, %c128], %17 {strides = array<i32>} : memref<16x512xf32, #tpu.memory_space<vmem>>, vector<16x32xf32>,
    %19 = vector.extract_strided_slice %2 {offsets = [80, 0], sizes = [16, 32], strides = [1, 1]} : vector<256x32xf32> to vector<16x32xf32>
    %20 = arith.mulf %3, %19 : vector<16x32xf32>
    %c0_11 = arith.constant 0 : index
    %c160 = arith.constant 160 : index
    %21 = vector.load %arg7[%c0_11, %c160] : memref<16x512xf32, #tpu.memory_space<vmem>>, vector<16x32xf32>
    tpu.vector_store %arg7[%c0_11, %c160], %20 {strides = array<i32>} : memref<16x512xf32, #tpu.memory_space<vmem>>, vector<16x32xf32>,
    %22 = vector.extract_strided_slice %2 {offsets = [96, 0], sizes = [16, 32], strides = [1, 1]} : vector<256x32xf32> to vector<16x32xf32>
    %23 = arith.mulf %3, %22 : vector<16x32xf32>
    %c0_12 = arith.constant 0 : index
    %c192 = arith.constant 192 : index
    %24 = vector.load %arg7[%c0_12, %c192] : memref<16x512xf32, #tpu.memory_space<vmem>>, vector<16x32xf32>
    tpu.vector_store %arg7[%c0_12, %c192], %23 {strides = array<i32>} : memref<16x512xf32, #tpu.memory_space<vmem>>, vector<16x32xf32>,
    %25 = vector.extract_strided_slice %2 {offsets = [112, 0], sizes = [16, 32], strides = [1, 1]} : vector<256x32xf32> to vector<16x32xf32>
    %26 = arith.mulf %3, %25 : vector<16x32xf32>
    %c0_13 = arith.constant 0 : index
    %c224 = arith.constant 224 : index
    %27 = vector.load %arg7[%c0_13, %c224] : memref<16x512xf32, #tpu.memory_space<vmem>>, vector<16x32xf32>
    tpu.vector_store %arg7[%c0_13, %c224], %26 {strides = array<i32>} : memref<16x512xf32, #tpu.memory_space<vmem>>, vector<16x32xf32>,
    %28 = vector.extract_strided_slice %2 {offsets = [128, 0], sizes = [16, 32], strides = [1, 1]} : vector<256x32xf32> to vector<16x32xf32>
    %29 = arith.mulf %3, %28 : vector<16x32xf32>
    %c0_14 = arith.constant 0 : index
    %c256 = arith.constant 256 : index
    %30 = vector.load %arg7[%c0_14, %c256] : memref<16x512xf32, #tpu.memory_space<vmem>>, vector<16x32xf32>
    tpu.vector_store %arg7[%c0_14, %c256], %29 {strides = array<i32>} : memref<16x512xf32, #tpu.memory_space<vmem>>, vector<16x32xf32>,
    %31 = vector.extract_strided_slice %2 {offsets = [144, 0], sizes = [16, 32], strides = [1, 1]} : vector<256x32xf32> to vector<16x32xf32>
    %32 = arith.mulf %3, %31 : vector<16x32xf32>
    %c0_15 = arith.constant 0 : index
    %c288 = arith.constant 288 : index
    %33 = vector.load %arg7[%c0_15, %c288] : memref<16x512xf32, #tpu.memory_space<vmem>>, vector<16x32xf32>
    tpu.vector_store %arg7[%c0_15, %c288], %32 {strides = array<i32>} : memref<16x512xf32, #tpu.memory_space<vmem>>, vector<16x32xf32>,
    %34 = vector.extract_strided_slice %2 {offsets = [160, 0], sizes = [16, 32], strides = [1, 1]} : vector<256x32xf32> to vector<16x32xf32>
    %35 = arith.mulf %3, %34 : vector<16x32xf32>
    %c0_16 = arith.constant 0 : index
    %c320 = arith.constant 320 : index
    %36 = vector.load %arg7[%c0_16, %c320] : memref<16x512xf32, #tpu.memory_space<vmem>>, vector<16x32xf32>
    tpu.vector_store %arg7[%c0_16, %c320], %35 {strides = array<i32>} : memref<16x512xf32, #tpu.memory_space<vmem>>, vector<16x32xf32>,
    %37 = vector.extract_strided_slice %2 {offsets = [176, 0], sizes = [16, 32], strides = [1, 1]} : vector<256x32xf32> to vector<16x32xf32>
    %38 = arith.mulf %3, %37 : vector<16x32xf32>
    %c0_17 = arith.constant 0 : index
    %c352 = arith.constant 352 : index
    %39 = vector.load %arg7[%c0_17, %c352] : memref<16x512xf32, #tpu.memory_space<vmem>>, vector<16x32xf32>
    tpu.vector_store %arg7[%c0_17, %c352], %38 {strides = array<i32>} : memref<16x512xf32, #tpu.memory_space<vmem>>, vector<16x32xf32>,
    %40 = vector.extract_strided_slice %2 {offsets = [192, 0], sizes = [16, 32], strides = [1, 1]} : vector<256x32xf32> to vector<16x32xf32>
    %41 = arith.mulf %3, %40 : vector<16x32xf32>
    %c0_18 = arith.constant 0 : index
    %c384 = arith.constant 384 : index
    %42 = vector.load %arg7[%c0_18, %c384] : memref<16x512xf32, #tpu.memory_space<vmem>>, vector<16x32xf32>
    tpu.vector_store %arg7[%c0_18, %c384], %41 {strides = array<i32>} : memref<16x512xf32, #tpu.memory_space<vmem>>, vector<16x32xf32>,
    %43 = vector.extract_strided_slice %2 {offsets = [208, 0], sizes = [16, 32], strides = [1, 1]} : vector<256x32xf32> to vector<16x32xf32>
    %44 = arith.mulf %3, %43 : vector<16x32xf32>
    %c0_19 = arith.constant 0 : index
    %c416 = arith.constant 416 : index
    %45 = vector.load %arg7[%c0_19, %c416] : memref<16x512xf32, #tpu.memory_space<vmem>>, vector<16x32xf32>
    tpu.vector_store %arg7[%c0_19, %c416], %44 {strides = array<i32>} : memref<16x512xf32, #tpu.memory_space<vmem>>, vector<16x32xf32>,
    %46 = vector.extract_strided_slice %2 {offsets = [224, 0], sizes = [16, 32], strides = [1, 1]} : vector<256x32xf32> to vector<16x32xf32>
    %47 = arith.mulf %3, %46 : vector<16x32xf32>
    %c0_20 = arith.constant 0 : index
    %c448 = arith.constant 448 : index
    %48 = vector.load %arg7[%c0_20, %c448] : memref<16x512xf32, #tpu.memory_space<vmem>>, vector<16x32xf32>
    tpu.vector_store %arg7[%c0_20, %c448], %47 {strides = array<i32>} : memref<16x512xf32, #tpu.memory_space<vmem>>, vector<16x32xf32>,
    %49 = vector.extract_strided_slice %2 {offsets = [240, 0], sizes = [16, 32], strides = [1, 1]} : vector<256x32xf32> to vector<16x32xf32>
    %50 = arith.mulf %3, %49 : vector<16x32xf32>
    %c0_21 = arith.constant 0 : index
    %c480 = arith.constant 480 : index
    %51 = vector.load %arg7[%c0_21, %c480] : memref<16x512xf32, #tpu.memory_space<vmem>>, vector<16x32xf32>
    tpu.vector_store %arg7[%c0_21, %c480], %50 {strides = array<i32>} : memref<16x512xf32, #tpu.memory_space<vmem>>, vector<16x32xf32>,
    %c0_22 = arith.constant 0 : index
    %c0_23 = arith.constant 0 : index
    %52 = vector.load %arg4[%c0_22, %c0_23] : memref<16x16xf32, #tpu.memory_space<vmem>>, vector<16x16xf32>
    %c0_24 = arith.constant 0 : index
    %c0_25 = arith.constant 0 : index
    %53 = vector.load %arg7[%c0_24, %c0_25] : memref<16x512xf32, #tpu.memory_space<vmem>>, vector<16x512xf32>
    %cst_26 = arith.constant dense<0.000000e+00> : vector<16x512xf32>
    %54 = tpu.matmul %52, %53, %cst_26 {dimension_numbers = #tpu.dot_dimension_numbers<[1], [0], [0], [1], [0, 0, 1, 1], [], []>} : vector<16x16xf32>, vector<16x512xf32>, vector<16x512xf32> -> vector<16x512xf32>
    %c0_27 = arith.constant 0 : index
    %c0_28 = arith.constant 0 : index
    %55 = vector.load %arg5[%c0_27, %c0_28] : memref<1x512xf32, #tpu.memory_space<vmem>>, vector<1x512xf32>
    %56 = vector.broadcast %55 : vector<1x512xf32> to vector<16x512xf32>
    %57 = arith.addf %54, %56 : vector<16x512xf32>
    %c0_29 = arith.constant 0 : index
    %c0_30 = arith.constant 0 : index
    %58 = vector.load %arg6[%c0_29, %c0_30] : memref<16x512xf32, #tpu.memory_space<vmem>>, vector<16x512xf32>
    tpu.vector_store %arg6[%c0_29, %c0_30], %57 {strides = array<i32>} : memref<16x512xf32, #tpu.memory_space<vmem>>, vector<16x512xf32>,
    return
  }
  func.func @transform_0(%arg0: i32) -> (i32, i32) {
    %c0_i32 = arith.constant 0 : i32
    %c0_i32_0 = arith.constant 0 : i32
    return %arg0, %c0_i32 : i32, i32
  }
  func.func @transform_1(%arg0: i32) -> (i32, i32) {
    %c0_i32 = arith.constant 0 : i32
    %c0_i32_0 = arith.constant 0 : i32
    %c0_i32_1 = arith.constant 0 : i32
    return %c0_i32, %c0_i32_0 : i32, i32
  }
  func.func @transform_2(%arg0: i32) -> (i32, i32) {
    %c0_i32 = arith.constant 0 : i32
    %c0_i32_0 = arith.constant 0 : i32
    %c0_i32_1 = arith.constant 0 : i32
    return %c0_i32, %c0_i32_0 : i32, i32
  }
  func.func @transform_3(%arg0: i32) -> (i32, i32) {
    %c0_i32 = arith.constant 0 : i32
    %c0_i32_0 = arith.constant 0 : i32
    %c0_i32_1 = arith.constant 0 : i32
    return %c0_i32, %c0_i32_0 : i32, i32
  }
  func.func @transform_4(%arg0: i32) -> (i32, i32) {
    %c0_i32 = arith.constant 0 : i32
    %c0_i32_0 = arith.constant 0 : i32
    %c0_i32_1 = arith.constant 0 : i32
    return %c0_i32, %c0_i32_0 : i32, i32
  }
  func.func @transform_5(%arg0: i32) -> (i32, i32) {
    %c0_i32 = arith.constant 0 : i32
    %c0_i32_0 = arith.constant 0 : i32
    return %c0_i32, %arg0 : i32, i32
  }
}

</mosaic_0001>

<bundles_post_ra>
// kernel: modulated_graph_conv.1
= control target key start
LH: loop header
LB: loop body
LE: loop exit
PB: predicated region body
PF: predicated region fallthrough
CT: control target
= control target key end

     0   :  { %s1271_s18 = smov 0   ;;  %s1273_s19 = smov 0   ;;  %s1532_s0 = inlined_call_operand.vmem [shape: f32[512,16], index: 0, kind: input, shape index: {}]   ;;  %s1533_s1 = inlined_call_operand.vmem [shape: f32[16,32], index: 1, kind: input, shape index: {}]   ;;  %s1534_s2 = inlined_call_operand.vmem [shape: f32[16,32], index: 2, kind: input, shape index: {}]   ;;  %s1535_s3 = inlined_call_operand.vmem [shape: f32[16,16], index: 3, kind: input, shape index: {}]   ;;  %s1536_s4 = inlined_call_operand.vmem [shape: f32[1,512], index: 4, kind: input, shape index: {}]   ;;  %s1537_s5 = inlined_call_operand.vmem [shape: f32[16,1024], index: 5, kind: output, shape index: {}]  }
   0x1   :  { %s1275_s20 = smov 0  }
   0x2 LB: > { %s1035_s21 = sadd.s32 4294967295, %s1235_s20   ;;  %s1284_s22 = sadd.s32 1, %s1235_s20   ;;  %s1235_s20 = sphi %s1275_s20, %s1541_s20   ;;  %s1231_s19 = sphi %s1273_s19, %s1540_s19   ;;  %s1227_s18 = sphi %s1271_s18, %s1539_s18  }
   0x3   : > { %s129_s23 = ssub.s32 %s1235_s20, %s1284_s22  ;;  %s132_s24 = sadd.s32 1, %s1231_s19 }
   0x4   : > { %p130_p0 = scmp.eq.s32.totalorder %s129_s23, 0  ;;  %p142_p1 = scmp.ne.s32.totalorder %s1231_s19, %s1227_s18 }
   0x5   : > { %p143_p2 = scmp.eq.s32.totalorder %s1035_s21, 1  ;;  %p1039_p3 = scmp.ge.s32.totalorder %s1235_s20, 1 }
   0x6   : > { %s1291_s25 = scalar_select %p130_p0, %s1231_s19, %s132_s24  }
   0x7   : > { %p1293_p4 = por %p143_p2, %p142_p1  ;;  %p188_p5 = scmp.lt.s32.totalorder %s1235_s20, 3 }
   0x9   : > { %p189_p6 = pnand %p1039_p3, %p188_p5 }
   0xa   : > { %v254_v0 = vld [vmem:[%s1533_s1] sm:$0xff] (!%p189_p6)  ;;  %v255_v1 = vld [vmem:[%s1533_s1 + $0x8] sm:$0xff] (!%p189_p6)  ;;  %s1303_s6 = sshll.u32 (!%p189_p6), %s1035_s21, 5  ;;  %vm256_vm0 = vcmask (!%p189_p6), 130048   ;;  %vm582_vm1 = vcmask (!%p189_p6), 261120   ;;  %s1237_s16 = smov (!%p189_p6), 64  }
   0xb   : > { %192 = sbr.rel (%p189_p6) target bundleno = 643 (0x283), region = 40  ;;  %v1171_v2 = vpack.c.bf16 (!%p189_p6), %v255_v1, %v254_v0  ;;  %p216_p7 = scmp.lt.s32.totalorder (!%p189_p6), %s1303_s6, 63  ;;  %v1379_v35 = vld [vmem:[%s1534_s2 + $0x8] sm:$0xff] (!%p189_p6)  ;;  %v1384_v36 = vld [vmem:[%s1534_s2] sm:$0xff] (!%p189_p6)  ;;  %vm595_vm2 = vcmask (!%p189_p6), 523520   ;;  %vm608_vm3 = vcmask (!%p189_p6), 785920  }
   0xc   : > { %s1238_s17 = smov (!%p189_p6), 32   ;;  %s1239_s20 = smov (!%p189_p6), 96   ;;  %vm621_vm4 = vcmask (!%p189_p6), 1048320  }
   0xd   : > { %1172 = vmatprep.subr.bf16.mxu0 (!%p189_p6), %v1171_v2  ;;  %1183 = vmatprep.subr.bf16.mxu1 (!%p189_p6), %v1171_v2  ;;  %s212_s28 = sand.u32 (!%p189_p6), 1, %s1227_s18  }
   0xe   : > { %1174 = vmatpush3.bf16.msra.mxu0 (!%p189_p6), %v1171_v2  ;;  %1184 = vmatpush3.bf16.msra.mxu1 (!%p189_p6), %v1171_v2 }
  0x12   : > { %s217_s7 = scalar_select %p216_p7, %s1303_s6, 63 }
  0x13   : > { %s953_s10 = scalar_lea.vmem (%p1293_p4), %s1537_s5, %s1303_s6 }
  0x14   : > { %s1042_s8 = sshll.u32 %s217_s7, 3  ;;  %s1040_s7 = sshll.u32 %s212_s28, 6 }
  0x15   : > { %s1310_s11 = scalar_lea.vmem %s1532_s0, %s1042_s8  ;;  %s1498_s8 = scalar_lea.vmem [#allocation3], %s1040_s7 }
  0x16   : > { %v222_v3 = vld [vmem:[%s1310_s11] sm:$0xff]  ;;  %v223_v5 = vld [vmem:[%s1310_s11 + $0x8] sm:$0xff]  ;;  %v224_v7 = vld [vmem:[%s1310_s11 + $0x10] sm:$0xff] }
  0x17   : > { %v242_v4 = vld [vmem:[%s1310_s11 + $0xa0] sm:$0xff]  ;;  %1123 = vmatprep.mubr.msk.f32.mxu0 %vm256_vm0, %v222_v3  ;;  %v243_v6 = vld [vmem:[%s1310_s11 + $0xa8] sm:$0xff]  ;;  %v244_v8 = vld [vmem:[%s1310_s11 + $0xb0] sm:$0xff] }
  0x18   : > { %1153 = vmatprep.mubr.msk.f32.mxu1 %vm256_vm0, %v242_v4  ;;  %1124 = vmatmul.mubr.msk.f32.vlgmr.msra.gmra.mrb[0].mxu0 %vm256_vm0, %v223_v5  ;;  %v225_v9 = vld [vmem:[%s1310_s11 + $0x18] sm:$0xff]  ;;  %v226_v11 = vld [vmem:[%s1310_s11 + $0x20] sm:$0xff]  ;;  %v227_v13 = vld [vmem:[%s1310_s11 + $0x28] sm:$0xff] }
  0x19   : > { %1154 = vmatmul.mubr.msk.f32.vlgmr.msra.gmra.mrb[0].mxu1 %vm256_vm0, %v243_v6  ;;  %1126 = vmatprep.mubr.msk.f32.mxu0 %vm256_vm0, %v224_v7  ;;  %v245_v10 = vld [vmem:[%s1310_s11 + $0xb8] sm:$0xff]  ;;  %v246_v12 = vld [vmem:[%s1310_s11 + $0xc0] sm:$0xff]  ;;  %v247_v14 = vld [vmem:[%s1310_s11 + $0xc8] sm:$0xff] }
  0x1a   : > { %1156 = vmatprep.mubr.msk.f32.mxu1 %vm256_vm0, %v244_v8  ;;  %v228_v15 = vld [vmem:[%s1310_s11 + $0x30] sm:$0xff]  ;;  %v229_v17 = vld [vmem:[%s1310_s11 + $0x38] sm:$0xff]  ;;  %v250_v19 = vld [vmem:[%s1310_s11 + $0xe0] sm:$0xff] }
  0x1b   : > { %v248_v16 = vld [vmem:[%s1310_s11 + $0xd0] sm:$0xff]  ;;  %v249_v18 = vld [vmem:[%s1310_s11 + $0xd8] sm:$0xff]  ;;  %v230_v20 = vld [vmem:[%s1310_s11 + $0x40] sm:$0xff] }
  0x1c   : > { %1127 = vmatmul.mubr.msk.f32.gmra.mrb[2].mxu0 %vm256_vm0, %v225_v9  ;;  %v251_v21 = vld [vmem:[%s1310_s11 + $0xe8] sm:$0xff]  ;;  %v232_v23 = vld [vmem:[%s1310_s11 + $0x50] sm:$0xff]  ;;  %v233_v25 = vld [vmem:[%s1310_s11 + $0x58] sm:$0xff] }
  0x1d   : > { %1157 = vmatmul.mubr.msk.f32.gmra.mrb[2].mxu1 %vm256_vm0, %v245_v10  ;;  %1129 = vmatprep.mubr.msk.f32.mxu0 %vm256_vm0, %v226_v11  ;;  %v231_v22 = vld [vmem:[%s1310_s11 + $0x48] sm:$0xff]  ;;  %v252_v24 = vld [vmem:[%s1310_s11 + $0xf0] sm:$0xff]  ;;  %v253_v26 = vld [vmem:[%s1310_s11 + $0xf8] sm:$0xff] }
  0x1e   : > { %1159 = vmatprep.mubr.msk.f32.mxu1 %vm256_vm0, %v246_v12  ;;  %v234_v27 = vld [vmem:[%s1310_s11 + $0x60] sm:$0xff]  ;;  %v235_v28 = vld [vmem:[%s1310_s11 + $0x68] sm:$0xff]  ;;  %v236_v29 = vld [vmem:[%s1310_s11 + $0x70] sm:$0xff] }
  0x1f   : > { %v237_v30 = vld [vmem:[%s1310_s11 + $0x78] sm:$0xff]  ;;  %v238_v31 = vld [vmem:[%s1310_s11 + $0x80] sm:$0xff]  ;;  %v239_v32 = vld [vmem:[%s1310_s11 + $0x88] sm:$0xff] }
  0x20   : > { %1130 = vmatmul.mubr.msk.f32.gmra.mrb[4].mxu0 %vm256_vm0, %v227_v13  ;;  %v240_v33 = vld [vmem:[%s1310_s11 + $0x90] sm:$0xff]  ;;  %v241_v34 = vld [vmem:[%s1310_s11 + $0x98] sm:$0xff] }
  0x21   : > { %1160 = vmatmul.mubr.msk.f32.gmra.mrb[4].mxu1 %vm256_vm0, %v247_v14  ;;  %1132 = vmatprep.mubr.msk.f32.mxu0 %vm256_vm0, %v228_v15 }
  0x22   : > { %1162 = vmatprep.mubr.msk.f32.mxu1 %vm256_vm0, %v248_v16 }
  0x24   : > { %1133 = vmatmul.mubr.msk.f32.gmra.mrb[6].mxu0 %vm256_vm0, %v229_v17 }
  0x25   : > { %1163 = vmatmul.mubr.msk.f32.gmra.mrb[6].mxu1 %vm256_vm0, %v249_v18  ;;  %1135 = vmatprep.mubr.msk.f32.mxu0 %vm256_vm0, %v230_v20 }
  0x26   : > { %1165 = vmatprep.mubr.msk.f32.mxu1 %vm256_vm0, %v250_v19 }
  0x28   : > { %1136 = vmatmul.mubr.msk.f32.gmra.mrb[8].mxu0 %vm256_vm0, %v231_v22 }
  0x29   : > { %1166 = vmatmul.mubr.msk.f32.gmra.mrb[8].mxu1 %vm256_vm0, %v251_v21  ;;  %1138 = vmatprep.mubr.msk.f32.mxu0 %vm256_vm0, %v232_v23 }
  0x2a   : > { %1168 = vmatprep.mubr.msk.f32.mxu1 %vm256_vm0, %v252_v24 }
  0x2c   : > { %1139 = vmatmul.mubr.msk.f32.gmra.mrb[10].mxu0 %vm256_vm0, %v233_v25 }
  0x2d   : > { %1169 = vmatmul.mubr.msk.f32.gmra.mrb[10].mxu1 %vm256_vm0, %v253_v26  ;;  %1141 = vmatprep.mubr.msk.f32.mxu0 %vm256_vm0, %v234_v27 }
  0x30   : > { %1142 = vmatmul.mubr.msk.f32.gmra.mrb[12].mxu0 %vm256_vm0, %v235_v28 }
  0x31   : > { %1144 = vmatprep.mubr.msk.f32.mxu0 %vm256_vm0, %v236_v29 }
  0x34   : > { %1145 = vmatmul.mubr.msk.f32.gmra.mrb[14].mxu0 %vm256_vm0, %v237_v30 }
  0x35   : > { %1147 = vmatprep.mubr.msk.f32.mxu0 %vm256_vm0, %v238_v31 }
  0x38   : > { %1148 = vmatmul.mubr.msk.f32.gmra.mrb[16].mxu0 %vm256_vm0, %v239_v32 }
  0x39   : > { %1150 = vmatprep.mubr.msk.f32.mxu0 %vm256_vm0, %v240_v33 }
  0x3c   : > { %1151 = vmatmul.mubr.msk.f32.gmra.mrb[18].mxu0 %vm256_vm0, %v241_v34  ;;  %v1240_v34 = vmov 0.0  }
  0x3d   : > { %846 = vmatprep.mubr.f32.mxu1 %v1240_v34 }
  0xeb   : > { %v1125_v37 = vpop.f32.mrb[0].mxu0 }
  0xec   : > { %v1155_v38 = vpop.f32.mrb[0].mxu1  ;;  %v581_v39 = vmul.f32 %v1125_v37, %v1379_v35  ;;  %v419_v41 = vpop.f32.mrb[1].mxu0 }
  0xed   : > { %v681_v40 = vmul.f32 %v1155_v38, %v1379_v35  ;;  %v519_v42 = vpop.f32.mrb[1].mxu1  ;;  %v580_v43 = vmul.f32 %v1384_v36, %v419_v41 }
  0xee   : > { %v680_v44 = vmul.f32 %v1384_v36, %v519_v42  ;;  %584 = vst.msk [vmem:[#allocation2 + $0x20] sm:$0xff] %vm582_vm1, %v581_v39 }
  0xef   : > { %686 = vrot.lane.b32.xlu1 %v681_v40, %s1237_s16  ;;  %583 = vst.msk [vmem:[#allocation2] sm:$0xff] %vm582_vm1, %v580_v43  ;;  %v1128_v45 = vpop.f32.mrb[2].mxu0 }
  0xf0   : > { %684 = vrot.lane.b32.xlu0 %v680_v44, %s1237_s16  ;;  %v1394_v46 = vpop.f32.mrb[2].mxu1  ;;  %v586_v47 = vmul.f32 %v1128_v45, %v1379_v35  ;;  %v429_v48 = vpop.f32.mrb[3].mxu0 }
  0xf1   : > { %v1397_v49 = vpop.f32.mrb[3].mxu1  ;;  %v585_v52 = vmul.f32 %v1384_v36, %v429_v48  ;;  %v693_v38 = vmul.f32 %v1394_v46, %v1379_v35 }
  0xf2   : > { %v692_v39 = vmul.f32 %v1384_v36, %v1397_v49 }
  0xf3   : > { %591 = vrot.lane.b32.xlu1 %v586_v47, %s1238_s17  ;;  %v1131_v50 = vpop.f32.mrb[4].mxu0 }
  0xf4   : > { %v1161_v51 = vpop.f32.mrb[4].mxu1  ;;  %v439_v53 = vpop.f32.mrb[5].mxu0  ;;  %v599_v60 = vmul.f32 %v1131_v50, %v1379_v35 }
  0xf5   : > { %v705_v54 = vmul.f32 %v1161_v51, %v1379_v35  ;;  %v539_v55 = vpop.f32.mrb[5].mxu1  ;;  %v598_v56 = vmul.f32 %v1384_v36, %v439_v53 }
  0xf6   : > { %v704_v57 = vmul.f32 %v1384_v36, %v539_v55 }
  0xf7   : > { %707 = vst.msk [vmem:[#allocation2 + $0x38] sm:$0xff] %vm582_vm1, %v705_v54  ;;  %589 = vrot.lane.b32.xlu1 %v585_v52, %s1238_s17  ;;  %602 = vrot.lane.b32.xlu0 %v598_v56, %s1237_s16  ;;  %v1134_v58 = vpop.f32.mrb[6].mxu0 }
  0xf8   : > { %706 = vst.msk [vmem:[#allocation2 + $0x18] sm:$0xff] %vm582_vm1, %v704_v57  ;;  %v1164_v59 = vpop.f32.mrb[6].mxu1  ;;  %v449_v61 = vpop.f32.mrb[7].mxu0  ;;  %v612_v3 = vmul.f32 %v1134_v58, %v1379_v35 }
  0xf9   : > { %v549_v62 = vpop.f32.mrb[7].mxu1  ;;  %v611_v63 = vmul.f32 %v1384_v36, %v449_v61  ;;  %v709_v11 = vmul.f32 %v1164_v59, %v1379_v35 }
  0xfa   : > { %v708_v0 = vmul.f32 %v1384_v36, %v549_v62 }
  0xfb   : > { %604 = vrot.lane.b32.xlu1 %v599_v60, %s1237_s16  ;;  %615 = vrot.lane.b32.xlu0 %v611_v63, %s1239_s20  ;;  %v1137_v2 = vpop.f32.mrb[8].mxu0 }
  0xfc   : > { %v1167_v1 = vpop.f32.mrb[8].mxu1  ;;  %v625_v5 = vmul.f32 %v1137_v2, %v1379_v35  ;;  %v459_v6 = vpop.f32.mrb[9].mxu0 }
  0xfd   : > { %v559_v4 = vpop.f32.mrb[9].mxu1  ;;  %v624_v7 = vmul.f32 %v1384_v36, %v459_v6  ;;  %v721_v16 = vmul.f32 %v1167_v1, %v1379_v35  ;;  %v744_v6 = vld [vmem:[%s1535_s3] sm:$0xff] }
  0xfe   : > { %627 = vst.msk [vmem:[#allocation2 + $0x28] sm:$0xff] %vm582_vm1, %v625_v5  ;;  %v720_v8 = vmul.f32 %v1384_v36, %v559_v4 }
  0xff   : > { %617 = vrot.lane.b32.xlu1 %v612_v3, %s1239_s20  ;;  %712 = vrot.lane.b32.xlu0 %v708_v0, %s1238_s17  ;;  %626 = vst.msk [vmem:[#allocation2 + $0x8] sm:$0xff] %vm582_vm1, %v624_v7  ;;  %v1140_v9 = vpop.f32.mrb[10].mxu0 }
 0x100   : > { %v1170_v10 = vpop.f32.mrb[10].mxu1  ;;  %v469_v12 = vpop.f32.mrb[11].mxu0  ;;  %v629_v14 = vmul.f32 %v1140_v9, %v1379_v35 }
 0x101   : > { %v569_v13 = vpop.f32.mrb[11].mxu1  ;;  %v628_v21 = vmul.f32 %v1384_v36, %v469_v12  ;;  %v733_v28 = vmul.f32 %v1170_v10, %v1379_v35  ;;  %v756_v12 = vlaneseq }
 0x102   : > { %v732_v33 = vmul.f32 %v1384_v36, %v569_v13 }
 0x103   : > { %714 = vrot.lane.b32.xlu1 %v709_v11, %s1238_s17  ;;  %724 = vrot.lane.b32.xlu0 %v720_v8, %s1237_s16  ;;  %v1143_v15 = vpop.f32.mrb[12].mxu0  ;;  %v745_v8 = vld [vmem:[%s1535_s3 + $0x8] sm:$0xff]  ;;  %v757_v13 = vshrl.u32 %v756_v12, 7 }
 0x104   : > { %v479_v17 = vpop.f32.mrb[13].mxu0  ;;  %v641_v18 = vmul.f32 %v1143_v15, %v1379_v35  ;;  %v754_v15 = vld [vmem:[%s1536_s4] sm:$0xf] }
 0x105   : > { %v640_v23 = vmul.f32 %v1384_v36, %v479_v17 }
 0x107   : > { %726 = vrot.lane.b32.xlu1 %v721_v16, %s1237_s16  ;;  %634 = vrot.lane.b32.xlu0 %v629_v14, %s1238_s17  ;;  %v1146_v19 = vpop.f32.mrb[14].mxu0  ;;  %v758_v14 = vsub.s32 0, %v757_v13  ;;  %v762_v16 = vsub.s32 1, %v757_v13 }
 0x108   : > { %v489_v20 = vpop.f32.mrb[15].mxu0  ;;  %v653_v22 = vmul.f32 %v1146_v19, %v1379_v35 }
 0x109   : > { %v652_v29 = vmul.f32 %v1384_v36, %v489_v20  ;;  %v759_v17 = vrot.slane %v754_v15, %v758_v14 }
 0x10b   : > { %646 = vrot.lane.b32.xlu1 %v641_v18, %s1237_s16  ;;  %632 = vrot.lane.b32.xlu0 %v628_v21, %s1238_s17  ;;  %v1149_v24 = vpop.f32.mrb[16].mxu0  ;;  %v763_v18 = vrot.slane %v754_v15, %v762_v16 }
 0x10c   : > { %v665_v25 = vmul.f32 %v1149_v24, %v1379_v35  ;;  %v499_v26 = vpop.f32.mrb[17].mxu0  ;;  %v766_v24 = vsub.s32 2, %v757_v13 }
 0x10d   : > { %v664_v27 = vmul.f32 %v1384_v36, %v499_v26 }
 0x10e   : > { %667 = vst.msk [vmem:[#allocation2 + $0x30] sm:$0xff] %vm582_vm1, %v665_v25 }
 0x10f   : > { %658 = vrot.lane.b32.xlu1 %v653_v22, %s1239_s20  ;;  %644 = vrot.lane.b32.xlu0 %v640_v23, %s1237_s16  ;;  %666 = vst.msk [vmem:[#allocation2 + $0x10] sm:$0xff] %vm582_vm1, %v664_v27  ;;  %v1152_v30 = vpop.f32.mrb[18].mxu0  ;;  %v770_v27 = vsub.s32 3, %v757_v13 }
 0x110   : > { %v509_v31 = vpop.f32.mrb[19].mxu0  ;;  %v669_v32 = vmul.f32 %v1152_v30, %v1379_v35 }
 0x111   : > { %v668_v37 = vmul.f32 %v1384_v36, %v509_v31  ;;  %v771_v30 = vrot.slane %v754_v15, %v770_v27 }
 0x113   : > { %738 = vrot.lane.b32.xlu1 %v733_v28, %s1239_s20  ;;  %656 = vrot.lane.b32.xlu0 %v652_v29, %s1239_s20  ;;  %v767_v29 = vrot.slane %v754_v15, %v766_v24 }
 0x117   : > { %674 = vrot.lane.b32.xlu1 %v669_v32, %s1238_s17  ;;  %736 = vrot.lane.b32.xlu0 %v732_v33, %s1239_s20 }
 0x11b   : > { %698 = vrot.lane.b32.xlu1 %v693_v38, %s1239_s20  ;;  %672 = vrot.lane.b32.xlu0 %v668_v37, %s1238_s17 }
 0x11f   : > { %696 = vrot.lane.b32.xlu0 %v692_v39, %s1239_s20 }
 0x161   : > { %v687_v40 = vpop.permute.xlu1 %686 }
 0x162   : > { %v685_v41 = vpop.permute.xlu0 %684 }
 0x165   : > { %v592_v42 = vpop.permute.xlu1 %591 }
 0x166   : > { %597 = vst.msk [vmem:[#allocation2 + $0x20] sm:$0xff] %vm595_vm2, %v592_v42 }
 0x169   : > { %v590_v43 = vpop.permute.xlu1 %589  ;;  %v603_v35 = vpop.permute.xlu0 %602 }
 0x16a   : > { %596 = vst.msk [vmem:[#allocation2] sm:$0xff] %vm595_vm2, %v590_v43 }
 0x16b   : > { %609 = vst.msk [vmem:[#allocation2] sm:$0xff] %vm608_vm3, %v603_v35 }
 0x16d   : > { %v605_v44 = vpop.permute.xlu1 %604  ;;  %v616_v36 = vpop.permute.xlu0 %615 }
 0x16e   : > { %610 = vst.msk [vmem:[#allocation2 + $0x20] sm:$0xff] %vm608_vm3, %v605_v44 }
 0x16f   : > { %622 = vst.msk [vmem:[#allocation2] sm:$0xff] %vm621_vm4, %v616_v36 }
 0x171   : > { %v618_v45 = vpop.permute.xlu1 %617  ;;  %v713_v46 = vpop.permute.xlu0 %712 }
 0x172   : > { %623 = vst.msk [vmem:[#allocation2 + $0x20] sm:$0xff] %vm621_vm4, %v618_v45 }
 0x173   : > { %718 = vst.msk [vmem:[#allocation2 + $0x18] sm:$0xff] %vm595_vm2, %v713_v46 }
 0x175   : > { %v715_v47 = vpop.permute.xlu1 %714  ;;  %v725_v48 = vpop.permute.xlu0 %724 }
 0x176   : > { %719 = vst.msk [vmem:[#allocation2 + $0x38] sm:$0xff] %vm595_vm2, %v715_v47  ;;  %v746_v1 = vld [vmem:[#allocation2] sm:$0xff] }
 0x177   : > { %730 = vst.msk [vmem:[#allocation2 + $0x18] sm:$0xff] %vm608_vm3, %v725_v48 }
 0x179   : > { %v727_v49 = vpop.permute.xlu1 %726  ;;  %v635_v50 = vpop.permute.xlu0 %634  ;;  %v750_v61 = vld [vmem:[#allocation2 + $0x20] sm:$0xff] }
 0x17a   : > { %731 = vst.msk [vmem:[#allocation2 + $0x38] sm:$0xff] %vm608_vm3, %v727_v49  ;;  %v1177_v2 = vpack.c.bf16 %v750_v61, %v746_v1 }
 0x17b   : > { %639 = vst.msk [vmem:[#allocation2 + $0x28] sm:$0xff] %vm595_vm2, %v635_v50 }
 0x17d   : > { %v647_v51 = vpop.permute.xlu1 %646  ;;  %v633_v52 = vpop.permute.xlu0 %632 }
 0x17e   : > { %651 = vst.msk [vmem:[#allocation2 + $0x28] sm:$0xff] %vm608_vm3, %v647_v51 }
 0x17f   : > { %638 = vst.msk [vmem:[#allocation2 + $0x8] sm:$0xff] %vm595_vm2, %v633_v52 }
 0x181   : > { %v659_v53 = vpop.permute.xlu1 %658  ;;  %v645_v54 = vpop.permute.xlu0 %644 }
 0x182   : > { %663 = vst.msk [vmem:[#allocation2 + $0x28] sm:$0xff] %vm621_vm4, %v659_v53 }
 0x183   : > { %650 = vst.msk [vmem:[#allocation2 + $0x8] sm:$0xff] %vm608_vm3, %v645_v54 }
 0x185   : > { %v739_v55 = vpop.permute.xlu1 %738  ;;  %v657_v56 = vpop.permute.xlu0 %656 }
 0x186   : > { %743 = vst.msk [vmem:[#allocation2 + $0x38] sm:$0xff] %vm621_vm4, %v739_v55  ;;  %662 = vst.msk [vmem:[#allocation2 + $0x8] sm:$0xff] %vm621_vm4, %v657_v56 }
 0x189   : > { %v675_v57 = vpop.permute.xlu1 %674  ;;  %v737_v58 = vpop.permute.xlu0 %736  ;;  %v751_v59 = vld [vmem:[#allocation2 + $0x28] sm:$0xff] }
 0x18a   : > { %679 = vst.msk [vmem:[#allocation2 + $0x30] sm:$0xff] %vm595_vm2, %v675_v57 }
 0x18b   : > { %691 = vst.msk [vmem:[#allocation2 + $0x30] sm:$0xff] %vm608_vm3, %v687_v40 }
 0x18c   : > { %742 = vst.msk [vmem:[#allocation2 + $0x18] sm:$0xff] %vm621_vm4, %v737_v58 }
 0x18d   : > { %v699_v60 = vpop.permute.xlu1 %698  ;;  %v673_v62 = vpop.permute.xlu0 %672  ;;  %v747_v63 = vld [vmem:[#allocation2 + $0x8] sm:$0xff]  ;;  %v753_v3 = vld [vmem:[#allocation2 + $0x38] sm:$0xff] }
 0x18e   : > { %703 = vst.msk [vmem:[#allocation2 + $0x30] sm:$0xff] %vm621_vm4, %v699_v60  ;;  %v1175_v0 = vpack.c.bf16 %v751_v59, %v747_v63 }
 0x18f   : > { %678 = vst.msk [vmem:[#allocation2 + $0x10] sm:$0xff] %vm595_vm2, %v673_v62 }
 0x190   : > { %690 = vst.msk [vmem:[#allocation2 + $0x10] sm:$0xff] %vm608_vm3, %v685_v41  ;;  %1176 = vmatprep.subr.bf16.mxu1 %v1175_v0 }
 0x191   : > { %1178 = vmatpush1.bf16.msra.mxu1 %v1177_v2  ;;  %v697_v4 = vpop.permute.xlu0 %696 }
 0x192   : > { %702 = vst.msk [vmem:[#allocation2 + $0x10] sm:$0xff] %vm621_vm4, %v697_v4 }
 0x193   : > { %v749_v5 = vld [vmem:[#allocation2 + $0x18] sm:$0xff] }
 0x194   : > { %v1179_v7 = vpack.c.bf16 %v753_v3, %v749_v5  ;;  %1075 = vmatmul.mubr.msk.f32.vlgmr.msra.gmra.mrb[12].mxu1 %vm256_vm0, %v744_v6 }
 0x195   : > { %852 = vmatprep.mubr.f32.mxu1 %v1240_v34  ;;  %v752_v10 = vld [vmem:[#allocation2 + $0x30] sm:$0xff] }
 0x196   : > { %1180 = vmatprep.subr.bf16.mxu1 %v1179_v7 }
 0x198   : > { %1076 = vmatmul.mubr.msk.f32.gmra.mrb[14].mxu1 %vm256_vm0, %v745_v8 }
 0x199   : > { %v748_v9 = vld [vmem:[#allocation2 + $0x10] sm:$0xff]  ;;  %923 = vmatprep.mubr.f32.mxu1 %v1240_v34 }
 0x19a   : > { %v1181_v11 = vpack.c.bf16 %v752_v10, %v748_v9 }
 0x19c   : > { %1182 = vmatpush1.bf16.msra.mxu1 %v1181_v11 }
 0x19f   : > { %1077 = vmatmul.mubr.msk.f32.vlgmr.msra.gmra.mrb[16].mxu1 %vm256_vm0, %v744_v6 }
 0x1a0   : > { %929 = vmatprep.mubr.f32.mxu1 %v1240_v34 }
 0x1a3   : > { %1078 = vmatmul.mubr.msk.f32.gmra.mrb[18].mxu1 %vm256_vm0, %v745_v8 }
 0x267   : > { %v848_v19 = vpop.f32.mrb[12].mxu1 }
 0x268   : > { %v849_v20 = vadd.f32 %v848_v19, %v759_v17  ;;  %v850_v21 = vpop.f32.mrb[13].mxu1 }
 0x269   : > { %v851_v22 = vadd.f32 %v850_v21, %v763_v18 }
 0x26a   : > { %936 = vst [vmem:[%s1498_s8] sm:$0xff] %v849_v20 }
 0x26b   : > { %937 = vst [vmem:[%s1498_s8 + $0x8] sm:$0xff] %v851_v22  ;;  %v854_v23 = vpop.f32.mrb[14].mxu1 }
 0x26c   : > { %v855_v25 = vadd.f32 %v854_v23, %v759_v17  ;;  %v856_v26 = vpop.f32.mrb[15].mxu1 }
 0x26d   : > { %v857_v28 = vadd.f32 %v856_v26, %v763_v18 }
 0x26e   : > { %940 = vst [vmem:[%s1498_s8 + $0x20] sm:$0xff] %v855_v25 }
 0x26f   : > { %941 = vst [vmem:[%s1498_s8 + $0x28] sm:$0xff] %v857_v28 }
 0x271   : > { %v966_v41 = vld [vmem:[%s1498_s8] sm:$0xff] (%p1293_p4) }
 0x272   : > { %v925_v31 = vpop.f32.mrb[16].mxu1  ;;  %v968_v42 = vld [vmem:[%s1498_s8 + $0x8] sm:$0xff] (%p1293_p4)  ;;  %967 = vst [vmem:[%s953_s10] sm:$0xff] (%p1293_p4), %v966_v41 }
 0x273   : > { %v926_v32 = vadd.f32 %v925_v31, %v767_v29  ;;  %v927_v33 = vpop.f32.mrb[17].mxu1  ;;  %969 = vst [vmem:[%s953_s10 + $0x8] sm:$0xff] (%p1293_p4), %v968_v42 }
 0x274   : > { %v928_v34 = vadd.f32 %v927_v33, %v771_v30  ;;  %950 = sbr.rel (!%p1293_p4) target bundleno = 643 (0x283), region = 44 }
 0x275   : > { %938 = vst [vmem:[%s1498_s8 + $0x10] sm:$0xff] %v926_v32  ;;  %v974_v44 = vld [vmem:[%s1498_s8 + $0x20] sm:$0xff] (%p1293_p4) }
 0x276   : > { %939 = vst [vmem:[%s1498_s8 + $0x18] sm:$0xff] %v928_v34  ;;  %v931_v37 = vpop.f32.mrb[18].mxu1  ;;  %v976_v36 = vld [vmem:[%s1498_s8 + $0x28] sm:$0xff] (%p1293_p4)  ;;  %975 = vst [vmem:[%s953_s10 + $0x40] sm:$0xff] (%p1293_p4), %v974_v44 }
 0x277   : > { %v932_v38 = vadd.f32 %v931_v37, %v767_v29  ;;  %v933_v39 = vpop.f32.mrb[19].mxu1  ;;  %977 = vst [vmem:[%s953_s10 + $0x48] sm:$0xff] (%p1293_p4), %v976_v36 }
 0x278   : > { %v934_v40 = vadd.f32 %v933_v39, %v771_v30 }
 0x279   : > { %942 = vst [vmem:[%s1498_s8 + $0x30] sm:$0xff] %v932_v38 }
 0x27a   : > { %943 = vst [vmem:[%s1498_s8 + $0x38] sm:$0xff] %v934_v40 }
 0x27c   : > { %v970_v43 = vld [vmem:[%s1498_s8 + $0x10] sm:$0xff] }
 0x27d   : > { %971 = vst [vmem:[%s953_s10 + $0x10] sm:$0xff] %v970_v43  ;;  %v972_v35 = vld [vmem:[%s1498_s8 + $0x18] sm:$0xff] }
 0x27e   : > { %973 = vst [vmem:[%s953_s10 + $0x18] sm:$0xff] %v972_v35 }
 0x280   : > { %v978_v45 = vld [vmem:[%s1498_s8 + $0x30] sm:$0xff] }
 0x281   : > { %v980_v46 = vld [vmem:[%s1498_s8 + $0x38] sm:$0xff]  ;;  %979 = vst [vmem:[%s953_s10 + $0x50] sm:$0xff] %v978_v45 }
 0x282   : > { %981 = vst [vmem:[%s953_s10 + $0x58] sm:$0xff] %v980_v46 }
 0x283 PF: > { %p12_p8 = scmp.ge.s32.totalorder %s1284_s22, 4   ;;  %s1539_s18 = smov %s1231_s19 }
 0x284   : > { %s1540_s19 = smov %s1291_s25  ;;  %s1541_s20 = smov %s1284_s22 }
 0x285   :  { %14 = sbr.rel (!%p12_p8) target bundleno = 2 (0x2), region = 93 }

</bundles_post_ra>
